<compile_context>
chip_gen: v7x
topology: tpu7x:2x2x1
jax: 0.10.0
libtpu: 0.0.40
codegen_flags: <defaults>
</compile_context>

<pallas_src>
import jax
import jax.numpy as jnp
from jax.experimental import pallas as pl
from jax.experimental.pallas import tpu as pltpu


# ---------------------------------------------------------------------------
# Kernel
# ---------------------------------------------------------------------------
def _make_linear_kernel(n_axis):
    def kernel(z_ref, w_ref, b_ref, o_ref):
        # (TM, K) @ (K, TN) on the MXU with f32 accumulation.
        acc = jnp.dot(z_ref[...], w_ref[...], preferred_element_type=jnp.float32)
        # b_ref holds the WHOLE (padded) bias, resident in VMEM; dynamic
        # leading-axis index selects this tile's (1, TN) slice.
        b = b_ref[pl.program_id(n_axis)]
        o_ref[...] = (acc + b).astype(o_ref.dtype)

    return kernel


# ---------------------------------------------------------------------------
# Tiling helpers
# ---------------------------------------------------------------------------
def _round_up(x, m):
    return ((x + m - 1) // m) * m


def _pick_tile(dim, align, cap):
    """Largest multiple of `align` that divides `dim` and is <= cap.
    `dim` is guaranteed (by padding) to be a multiple of `align`, so the
    search always succeeds (worst case: `align`)."""
    cap = max(align, min(dim, (cap // align) * align))
    for t in range(cap, 0, -align):
        if dim % t == 0:
            return t
    return align


_F32 = 4
# Per-step working-set budget. Double-buffering roughly doubles it, keeping the
# resident set <= ~24 MiB: safe inside v7x's 64 MiB physical VMEM and well
# under v5e/v6e once the scoped limit below is applied.
_STEP_BUDGET = 12 * 1024 * 1024
_VMEM_LIMIT = 32 * 1024 * 1024


# ---------------------------------------------------------------------------
# Wrapper
# ---------------------------------------------------------------------------
def simple_autoencoder_decoder(z, weight, bias):
    """Forward of SimpleAutoencoderDecoder: z @ W + b.

    z:      (B, latent_dim)
    weight: (latent_dim, out_channels)   -- torch fc2.weight transposed
    bias:   (out_channels,)
    returns (B, out_channels)
    """
    B, K = z.shape
    Kw, N = weight.shape
    assert Kw == K, "latent_dim mismatch"

    # --- Pad to hardware-friendly extents ---------------------------------
    # Batch -> sublane multiple (8); out_channels -> lane multiple (128) so the
    # output store is lane-dense (unmasked vst) even for tiny out_channels.
    Bp = _round_up(B, 8)
    Np = _round_up(max(N, 128), 128)
    if Bp != B:
        z = jnp.pad(z, ((0, Bp - B), (0, 0)))
    if Np != N:
        weight = jnp.pad(weight, ((0, 0), (0, Np - N)))
        bias = jnp.pad(bias, (0, Np - N))

    # --- Tile selection from the VMEM budget -------------------------------
    # N tile: lane-dense, as large as practical (capped at 2048 lanes).
    tn = _pick_tile(Np, 128, min(Np, 2048))
    # M tile: whatever fits the remaining per-step budget (dominated by the
    # f32 output tile since K is tiny). No K padding: this kernel is HBM-bound,
    # MXU fill is irrelevant.
    rem_elems = _STEP_BUDGET // _F32 - K * tn - Np
    tm_cap = max(8, rem_elems // (K + tn))
    tm = _pick_tile(Bp, 8, min(Bp, tm_cap))

    # v7x has 2 TensorCores with independent HBM paths: keep >= 2 blocks along
    # a "parallel" axis so the grid can be sharded across them. Costs at most
    # one extra grid step (~0.35 us) on single-TC v5e/v6e.
    if (Bp // tm) * (Np // tn) < 2 and Bp >= 16:
        tm = _pick_tile(Bp, 8, Bp // 2)

    m_tiles = Bp // tm
    n_tiles = Np // tn

    # --- Grid ordering: avoid re-streaming the larger panel ----------------
    # Order A (M outer, N inner): z tile resident across j; full weight panel
    #   re-read (m_tiles - 1) extra times.
    # Order B (N outer, M inner): weight tile resident across i; full z panel
    #   re-read (n_tiles - 1) extra times.
    w_bytes = K * Np * weight.dtype.itemsize
    z_bytes = Bp * K * z.dtype.itemsize
    redundant_a = (m_tiles - 1) * w_bytes
    redundant_b = (n_tiles - 1) * z_bytes

    if redundant_a <= redundant_b:
        grid = (m_tiles, n_tiles)
        n_axis = 1
        z_map = lambda i, j: (i, 0)
        w_map = lambda i, j: (0, j)
        o_map = lambda i, j: (i, j)
    else:
        grid = (n_tiles, m_tiles)
        n_axis = 0
        z_map = lambda j, i: (i, 0)
        w_map = lambda j, i: (0, j)
        o_map = lambda j, i: (i, j)
    b_map = lambda *_: (0, 0, 0)  # constant block index -> bias fetched once

    bias_blocks = bias.reshape(n_tiles, 1, tn)

    out = pl.pallas_call(
        _make_linear_kernel(n_axis),
        out_shape=jax.ShapeDtypeStruct((Bp, Np), z.dtype),
        grid_spec=pltpu.PrefetchScalarGridSpec(
            num_scalar_prefetch=0,
            grid=grid,
            in_specs=[
                pl.BlockSpec((tm, K), z_map),             # z tile
                pl.BlockSpec((K, tn), w_map),             # weight tile
                pl.BlockSpec((n_tiles, 1, tn), b_map),    # full bias, resident
            ],
            out_specs=pl.BlockSpec((tm, tn), o_map),
        ),
        compiler_params=pltpu.CompilerParams(
            # No reduction axis (K fully resident): both axes are independent.
            dimension_semantics=("parallel", "parallel"),
            vmem_limit_bytes=_VMEM_LIMIT,
        ),
    )(z, weight, bias_blocks)

    if Bp != B or Np != N:
        out = out[:B, :N]
    return out


def _reference(z, weight, bias):
    return z @ weight + bias


if __name__ == "__main__":
    key = jax.random.PRNGKey(0)

    # --- Small shapes consistent with the module's forward -----------------
    B, latent_dim, out_channels = 8, 16, 32
    kz, kw, kb, key = jax.random.split(key, 4)
    bound = 1.0 / (latent_dim ** 0.5)
    z = jax.random.normal(kz, (B, latent_dim), dtype=jnp.float32)
    # Weight stored as (in_features, out_features), i.e. torch weight^T.
    weight = jax.random.uniform(kw, (latent_dim, out_channels), jnp.float32,
                                minval=-bound, maxval=bound)
    bias = jax.random.uniform(kb, (out_channels,), jnp.float32,
                              minval=-bound, maxval=bound)

    out = jax.block_until_ready(simple_autoencoder_decoder(z, weight, bias))
    ref = _reference(z, weight, bias)
    assert out.shape == (B, out_channels)
    assert jnp.allclose(out, ref, atol=1e-5, rtol=1e-5)

    # --- Larger shape exercising the multi-block (2 M-tile) parallel path --
    B2, latent2, out2 = 1024, 64, 256
    kz2, kw2, kb2, key = jax.random.split(key, 4)
    bound2 = 1.0 / (latent2 ** 0.5)
    z2 = jax.random.normal(kz2, (B2, latent2), dtype=jnp.float32)
    w2 = jax.random.uniform(kw2, (latent2, out2), jnp.float32,
                            minval=-bound2, maxval=bound2)
    b2 = jax.random.uniform(kb2, (out2,), jnp.float32,
                            minval=-bound2, maxval=bound2)

    out2_arr = jax.block_until_ready(simple_autoencoder_decoder(z2, w2, b2))
    ref2 = _reference(z2, w2, b2)
    assert out2_arr.shape == (B2, out2)
    assert jnp.allclose(out2_arr, ref2, atol=1e-4, rtol=1e-4)

    print("KERNEL_OK")
</pallas_src>

<mosaic_0001>
module attributes {stable_mosaic.version = 11 : i64} {
  func.func @kernel(%arg0: i32, %arg1: i32, %arg2: memref<8x16xf32, #tpu.memory_space<vmem>>, %arg3: memref<16x128xf32, #tpu.memory_space<vmem>>, %arg4: memref<1x1x128xf32, #tpu.memory_space<vmem>>, %arg5: memref<8x128xf32, #tpu.memory_space<vmem>>) attributes {dimension_semantics = [#tpu.dimension_semantics<parallel>, #tpu.dimension_semantics<parallel>], iteration_bounds = array<i64: 1, 1>, scalar_prefetch = 0 : i64, scratch_operands = 0 : i64, tpu.core_type = #tpu.core_type<tc>, window_params = [{transform_indices = @transform_0, window_bounds = array<i64: 8, 16>}, {transform_indices = @transform_1, window_bounds = array<i64: 16, 128>}, {pipeline_mode = #tpu.pipeline_mode<synchronous>, transform_indices = @transform_2, window_bounds = array<i64: 1, 1, 128>}, {transform_indices = @transform_3, window_bounds = array<i64: 8, 128>}]} {
    %c0 = arith.constant 0 : index
    %c0_0 = arith.constant 0 : index
    %0 = vector.load %arg2[%c0, %c0_0] : memref<8x16xf32, #tpu.memory_space<vmem>>, vector<8x16xf32>
    %c0_1 = arith.constant 0 : index
    %c0_2 = arith.constant 0 : index
    %1 = vector.load %arg3[%c0_1, %c0_2] : memref<16x128xf32, #tpu.memory_space<vmem>>, vector<16x128xf32>
    %cst = arith.constant dense<0.000000e+00> : vector<8x128xf32>
    %2 = tpu.matmul %0, %1, %cst {dimension_numbers = #tpu.dot_dimension_numbers<[1], [0], [0], [1], [0, 0, 1, 1], [], []>} : vector<8x16xf32>, vector<16x128xf32>, vector<8x128xf32> -> vector<8x128xf32>
    %3 = arith.index_cast %arg1 : i32 to index
    %c0_3 = arith.constant 0 : index
    %c0_4 = arith.constant 0 : index
    %4 = vector.load %arg4[%3, %c0_3, %c0_4] : memref<1x1x128xf32, #tpu.memory_space<vmem>>, vector<1x1x128xf32>
    %5 = vector.shape_cast %4 : vector<1x1x128xf32> to vector<1x128xf32>
    %6 = vector.broadcast %5 : vector<1x128xf32> to vector<8x128xf32>
    %7 = arith.addf %2, %6 : vector<8x128xf32>
    %c0_5 = arith.constant 0 : index
    %c0_6 = arith.constant 0 : index
    %8 = vector.load %arg5[%c0_5, %c0_6] : memref<8x128xf32, #tpu.memory_space<vmem>>, vector<8x128xf32>
    tpu.vector_store %arg5[%c0_5, %c0_6], %7 {strides = array<i32>} : memref<8x128xf32, #tpu.memory_space<vmem>>, vector<8x128xf32>,
    return
  }
  func.func @transform_0(%arg0: i32, %arg1: i32) -> (i32, i32) {
    %c0_i32 = arith.constant 0 : i32
    %c0_i32_0 = arith.constant 0 : i32
    return %arg0, %c0_i32 : i32, i32
  }
  func.func @transform_1(%arg0: i32, %arg1: i32) -> (i32, i32) {
    %c0_i32 = arith.constant 0 : i32
    %c0_i32_0 = arith.constant 0 : i32
    return %c0_i32, %arg1 : i32, i32
  }
  func.func @transform_2(%arg0: i32, %arg1: i32) -> (i32, i32, i32) {
    %c0_i32 = arith.constant 0 : i32
    %c0_i32_0 = arith.constant 0 : i32
    %c0_i32_1 = arith.constant 0 : i32
    %c0_i32_2 = arith.constant 0 : i32
    return %c0_i32, %c0_i32_0, %c0_i32_1 : i32, i32, i32
  }
  func.func @transform_3(%arg0: i32, %arg1: i32) -> (i32, i32) {
    %c0_i32 = arith.constant 0 : i32
    return %arg0, %arg1 : i32, i32
  }
}

</mosaic_0001>

<bundles_post_ra>
// kernel: tpu_custom_call.1
= control target key start
LH: loop header
LB: loop body
LE: loop exit
PB: predicated region body
PF: predicated region fallthrough
CT: control target
= control target key end

     0   :  { %8 = vsyncpa [#allocation3], 0  ;;  %s311_s0 = inlined_call_operand.hbm [shape: f32[8,16], index: 0, kind: input, shape index: {}]   ;;  %s312_s1 = inlined_call_operand.hbm [shape: f32[16,128], index: 1, kind: input, shape index: {}]   ;;  %s313_s2 = inlined_call_operand.vmem [shape: f32[1,1,128], index: 2, kind: input, shape index: {}]   ;;  %s314_s3 = inlined_call_operand.hbm [shape: f32[8,128], index: 3, kind: output, shape index: {}]  }
   0x1   :  { %9 = vsyncpa [#allocation6], 0 }
   0x2   :  { %10 = vsyncpa [#allocation4], 0  ;;  %s237_s12 = smov [#allocation2]   ;;  %s238_s14 = smov [#allocation5]  }
   0x3   :  { %s17_s13 = sshll.u32 %s237_s12, 4  ;;  %s26_s15 = sshll.u32 %s238_s14, 4  ;;  %s18_s13 = int_to_ptr.vmem [resolvable:$true] %s17_s13  ;;  %s265_s15 = int_to_ptr.vmem [resolvable:$true] %s26_s15 }
   0x4   :  { %s165_s18 = scalar_lea.hbm %s311_s0, 128 }
   0x5   :  { %p166_p0 = scmp.ne.s32.totalorder %s311_s0, %s165_s18  ;;  %p169_p1 = scmp.lt.u32.totalorder %s165_s18, %s311_s0 }
   0x7   :  { %p171_p2 = pnand %p169_p1, %p166_p0 }
   0x9   :  { %174 = shalt.err (!%p171_p2)
}
   0xa   :  { %s175_s23 = scalar_lea.vmem %s18_s13, 128  ;;  %p180_p4 = scmp.lt.s32.totalorder %s18_s13, %s18_s13 }
   0xb   :  { %p176_p3 = scmp.ne.s32.totalorder %s18_s13, %s175_s23  ;;  %p181_p5 = scmp.lt.s32.totalorder %s175_s23, %s175_s23 }
   0xd   :  { %p182_p6 = por %p181_p5, %p180_p4 }
   0xf   :  { %p183_p7 = pnand %p182_p6, %p176_p3 }
  0x11   :  { %186 = shalt.err (!%p183_p7)
}
  0x12   :  { %20 = dma.hbm_to_vmem [thread:$0]  %s311_s0, 128, %s18_s13, [#allocation3]  }
  0x13   :  { %s187_s28 = scalar_lea.hbm %s312_s1, 256 }
  0x14   :  { %p188_p8 = scmp.ne.s32.totalorder %s312_s1, %s187_s28  ;;  %p191_p9 = scmp.lt.u32.totalorder %s187_s28, %s312_s1 }
  0x16   :  { %p193_p10 = pnand %p191_p9, %p188_p8 }
  0x18   :  { %196 = shalt.err (!%p193_p10)
}
  0x19   :  { %s197_s6 = scalar_lea.vmem %s265_s15, 256  ;;  %p202_p12 = scmp.lt.s32.totalorder %s265_s15, %s265_s15 }
  0x1a   :  { %p198_p11 = scmp.ne.s32.totalorder %s265_s15, %s197_s6  ;;  %p203_p13 = scmp.lt.s32.totalorder %s197_s6, %s197_s6 }
  0x1c   :  { %p204_p0 = por %p203_p13, %p202_p12 }
  0x1e   :  { %p205_p1 = pnand %p204_p0, %p198_p11 }
  0x20   :  { %208 = shalt.err (!%p205_p1)
}
  0x21   :  { %s239_s0 = smov 128   ;;  %s240_s7 = smov 8  }
  0x22   :  { %32 = dma.hbm_to_vmem [thread:$0]  %s312_s1, 256, %s265_s15, [#allocation6], %s239_s0, %s239_s0, %s240_s7  }
  0x23   :  { %231 = dma.done.wait [#allocation3], 128  }
  0x24   :  { %232 = vsyncadd [#allocation3], 4294967168 }
  0x25   :  { %233 = dma.done.wait [#allocation6], 256  }
  0x26   :  { %234 = vsyncadd [#allocation6], 4294967040  ;;  %v241_v0 = vmov 0.0|0.0   ;;  %vm242_vm0 = vmmov 0   ;;  %v243_v1 = vmov 0.0   ;;  %v42_v2 = vld [vmem:[#allocation5] sm:$0xff] }
  0x27   :  { %154 = vmatprep.subr.bf16.mxu0 %v241_v0  ;;  %151 = vmatprep.mubr.msk.f32.mxu0 %vm242_vm0, %v243_v1  ;;  %v43_v3 = vld [vmem:[#allocation5 + $0x8] sm:$0xff]  ;;  %v41_v5 = vld [vmem:[#allocation2] sm:$0xff]  ;;  %vm51_vm1 = vcmask 130048   ;;  %s244_s1 = smov [#allocation7]  }
  0x28   :  { %v155_v4 = vpack.c.bf16 %v43_v3, %v42_v2  ;;  %v142_v6 = vld [vmem:[%s313_s2] ss:$0 sm:$0xff]  ;;  %s132_s12 = sshll.u32 %s244_s1, 4  ;;  %s133_s12 = int_to_ptr.vmem [resolvable:$true] %s132_s12 }
  0x29   :  { %s209_s13 = scalar_lea.vmem %s133_s12, 128  ;;  %p214_p3 = scmp.lt.s32.totalorder %s133_s12, %s133_s12 }
  0x2a   :  { %156 = vmatpush3.bf16.msra.mxu0 %v155_v4  ;;  %p210_p2 = scmp.ne.s32.totalorder %s133_s12, %s209_s13  ;;  %p215_p4 = scmp.lt.s32.totalorder %s209_s13, %s209_s13 }
  0x2c   :  { %p216_p5 = por %p215_p4, %p214_p3 }
  0x2d   :  { %152 = vmatmul.mubr.msk.f32.vlgmr.msra.gmra.mrb[0].mxu0 %vm51_vm1, %v41_v5 }
  0x2e   :  { %p217_p6 = pnand %p216_p5, %p210_p2 }
 0x100   :  { %v121_v7 = vpop.f32.mrb[0].mxu0 }
 0x101   :  { %v122_v8 = vadd.f32 %v142_v6, %v121_v7  ;;  %v153_v9 = vpop.f32.mrb[1].mxu0 }
 0x103   :  { %125 = vst [vmem:[#allocation7] sm:$0xff] %v122_v8 }
 0x104   :  { %220 = shalt.err (!%p217_p6)
}
 0x105   :  { %s221_s16 = scalar_lea.hbm %s314_s3, 128 }
 0x106   :  { %p222_p7 = scmp.ne.s32.totalorder %s314_s3, %s221_s16  ;;  %p225_p8 = scmp.lt.u32.totalorder %s221_s16, %s314_s3 }
 0x108   :  { %p227_p9 = pnand %p225_p8, %p222_p7 }
 0x10a   :  { %230 = shalt.err (!%p227_p9)
}
 0x10b   :  { %135 = dma.vmem_to_hbm [thread:$0]  %s133_s12, 128, %s314_s3, [#allocation4]  }
 0x10c   :  { %235 = dma.done.wait [#allocation4], 128  }
 0x10d   :  { %236 = vsyncadd [#allocation4], 4294967168 }
 0x10e   :  { %139 = vsyncpa [#allocation3], 1 }
 0x10f   :  { %140 = vsyncpa [#allocation6], 1 }
 0x110   :  { %141 = vsyncpa [#allocation4], 1 }

</bundles_post_ra>
